<compile_context>
chip_gen: v6e
topology: v6e:2x2x1
jax: 0.10.0
libtpu: 0.0.40
codegen_flags: <defaults>
</compile_context>

<pallas_src>
import jax
import jax.numpy as jnp
from jax.experimental import pallas as pl
from jax.experimental.pallas import tpu as pltpu


def film_mlp_kernel(drug_ref, dose_ref,
                    w1d_ref, w1l_ref, b1_ref,
                    w2_ref, b2_ref,
                    w3g_ref, b3g_ref,
                    w3b_ref, b3b_ref,
                    gamma_ref, beta_ref):
    # Activations may arrive bf16 (streaming); compute in f32 throughout.
    drug = drug_ref[...].astype(jnp.float32)
    dose = dose_ref[...].astype(jnp.float32)

    # Layer 1: Linear(concat(drug, logdose)) == drug @ W1_drug + logdose * W1_dose
    h = jnp.dot(drug, w1d_ref[...], preferred_element_type=jnp.float32)
    h = h + dose * w1l_ref[...] + b1_ref[...]
    h = jnp.maximum(h, 0.0)

    # Layer 2: Linear + ReLU
    h = jnp.dot(h, w2_ref[...], preferred_element_type=jnp.float32)
    h = jnp.maximum(h + b2_ref[...], 0.0)

    # Output layer, split into gamma / beta halves (two lane-dense stores,
    # no padded slab, no wrapper-side chunk copies).
    gamma_ref[...] = (jnp.dot(h, w3g_ref[...], preferred_element_type=jnp.float32)
                      + b3g_ref[...]).astype(gamma_ref.dtype)
    beta_ref[...] = (jnp.dot(h, w3b_ref[...], preferred_element_type=jnp.float32)
                     + b3b_ref[...]).astype(beta_ref.dtype)


def _round_up(n, m=128):
    return ((n + m - 1) // m) * m


def _round_up8(n):
    return ((n + 7) // 8) * 8


def prepare_film_params(params, drug_dim):
    """One-time parameter preparation (hoisted out of the per-call forward).

    params = (w1, b1, w2, b2, w3, b3) with weights stored [in, out] and biases
    [1, out].  Exactly two hidden layers are assumed (as in the module config
    used here).

    Returns a tuple of padded / split arrays consumed by film_modulator_forward.
    Zero-padding of hidden dims + zero-padded biases is semantics-preserving
    through ReLU and the downstream matmuls.  The output dim is NOT padded.
    """
    w1, b1, w2, b2, w3, b3 = params
    control_dim = w3.shape[1] // 2
    H1, H2 = w1.shape[1], w2.shape[1]
    H1p, H2p = _round_up(H1), _round_up(H2)

    # Split first-layer weight: drug rows vs. logdose row (kills the concat).
    w1_drug = jnp.pad(w1[:drug_dim, :], ((0, 0), (0, H1p - H1)))   # [drug_dim, H1p]
    w1_dose = jnp.pad(w1[drug_dim:, :], ((0, 0), (0, H1p - H1)))   # [1, H1p]
    b1_p = jnp.pad(b1, ((0, 0), (0, H1p - H1)))                    # [1, H1p]

    w2_p = jnp.pad(w2, ((0, H1p - H1), (0, H2p - H2)))             # [H1p, H2p]
    b2_p = jnp.pad(b2, ((0, 0), (0, H2p - H2)))                    # [1, H2p]

    # Output layer: pad only the contraction axis; split gamma / beta halves.
    w3_p = jnp.pad(w3, ((0, H2p - H2), (0, 0)))                    # [H2p, 2C]
    w3_gamma = w3_p[:, :control_dim]
    w3_beta = w3_p[:, control_dim:2 * control_dim]
    b3_gamma = b3[:, :control_dim]
    b3_beta = b3[:, control_dim:2 * control_dim]

    return (w1_drug, w1_dose, b1_p, w2_p, b2_p,
            w3_gamma, b3_gamma, w3_beta, b3_beta, control_dim)


def _pick_batch_tile(B, block_b):
    """Batch tile: big enough to amortize ~0.35us/step grid overhead, but with
    >= 2 grid steps for large B so both v7x TensorCores get work."""
    if B <= 1024:
        return B
    half = _round_up8(-(-B // 2))   # ceil(B/2), 8-aligned -> guarantees >=2 steps
    return min(block_b, half)


def film_modulator_forward(drug_emb, logdose, prepared, *, block_b=4096,
                           stream_dtype=None):
    """FiLMModulator.forward: returns (gamma, beta).

    `prepared` is the output of prepare_film_params (call once, reuse).
    stream_dtype=jnp.bfloat16 halves streamed activation bytes on v6e/v7x
    (accumulation stays f32 in the kernel).  Leave None on v5e.
    """
    (w1_drug, w1_dose, b1_p, w2_p, b2_p,
     w3_gamma, b3_gamma, w3_beta, b3_beta, control_dim) = prepared

    B, drug_dim = drug_emb.shape
    if stream_dtype is not None:
        drug_emb = drug_emb.astype(stream_dtype)
        logdose = logdose.astype(stream_dtype)

    TB = _pick_batch_tile(B, block_b)
    grid = (pl.cdiv(B, TB),)

    def resident(arr):  # full-array block, same tile every grid step -> no re-DMA
        return pl.BlockSpec(arr.shape, lambda i: (0, 0))

    gamma, beta = pl.pallas_call(
        film_mlp_kernel,
        out_shape=(jax.ShapeDtypeStruct((B, control_dim), jnp.float32),
                   jax.ShapeDtypeStruct((B, control_dim), jnp.float32)),
        grid_spec=pltpu.PrefetchScalarGridSpec(
            num_scalar_prefetch=0,
            grid=grid,
            in_specs=[
                pl.BlockSpec((TB, drug_dim), lambda i: (i, 0)),   # drug_emb
                pl.BlockSpec((TB, 1), lambda i: (i, 0)),          # logdose
                resident(w1_drug), resident(w1_dose), resident(b1_p),
                resident(w2_p), resident(b2_p),
                resident(w3_gamma), resident(b3_gamma),
                resident(w3_beta), resident(b3_beta),
            ],
            out_specs=[
                pl.BlockSpec((TB, control_dim), lambda i: (i, 0)),  # gamma
                pl.BlockSpec((TB, control_dim), lambda i: (i, 0)),  # beta
            ],
        ),
        compiler_params=pltpu.CompilerParams(
            dimension_semantics=("parallel",)),
    )(drug_emb, logdose,
      w1_drug, w1_dose, b1_p,
      w2_p, b2_p,
      w3_gamma, b3_gamma, w3_beta, b3_beta)

    return gamma, beta


def init_film_params(key, drug_dim, control_dim, hidden_dims):
    """Deterministic init mirroring PyTorch nn.Linear default U(-1/sqrt(fan_in), +).

    Weights stored as [in_dim, out_dim]; biases as [1, out_dim].
    """
    input_dim = drug_dim + 1
    dims = [input_dim] + list(hidden_dims) + [2 * control_dim]
    params = []
    for in_dim, out_dim in zip(dims[:-1], dims[1:]):
        key, kw, kb = jax.random.split(key, 3)
        bound = 1.0 / (in_dim ** 0.5)
        w = jax.random.uniform(kw, (in_dim, out_dim), jnp.float32, -bound, bound)
        b = jax.random.uniform(kb, (1, out_dim), jnp.float32, -bound, bound)
        params.extend([w, b])
    return tuple(params)


def film_modulator_reference(drug_emb, logdose, params):
    """Pure-JAX reference for correctness check."""
    w1, b1, w2, b2, w3, b3 = params
    x = jnp.concatenate([drug_emb, logdose], axis=-1)
    h = jnp.maximum(x @ w1 + b1, 0.0)
    h = jnp.maximum(h @ w2 + b2, 0.0)
    out = h @ w3 + b3
    c = w3.shape[1] // 2
    return out[:, :c], out[:, c:]


if __name__ == "__main__":
    # Small shapes consistent with the module.
    B = 4
    drug_dim = 8
    control_dim = 4
    hidden_dims = [32, 32]

    key = jax.random.PRNGKey(0)
    key, k_emb, k_dose = jax.random.split(key, 3)
    drug_emb = jax.random.normal(k_emb, (B, drug_dim), jnp.float32)
    logdose = jax.random.normal(k_dose, (B, 1), jnp.float32)

    params = init_film_params(jax.random.PRNGKey(42), drug_dim, control_dim,
                              hidden_dims)
    # One-time parameter preparation (hoisted out of the hot path).
    prepared = prepare_film_params(params, drug_dim)
    prepared = jax.tree_util.tree_map(
        lambda a: jax.block_until_ready(a) if isinstance(a, jax.Array) else a,
        prepared)

    gamma, beta = film_modulator_forward(drug_emb, logdose, prepared)
    gamma = jax.block_until_ready(gamma)
    beta = jax.block_until_ready(beta)

    g_ref, b_ref = film_modulator_reference(drug_emb, logdose, params)
    assert gamma.shape == (B, control_dim) and beta.shape == (B, control_dim)
    assert jnp.allclose(gamma, g_ref, atol=1e-5, rtol=1e-5)
    assert jnp.allclose(beta, b_ref, atol=1e-5, rtol=1e-5)

    print("KERNEL_OK")
</pallas_src>

<mosaic_0001>
module attributes {stable_mosaic.version = 11 : i64} {
  func.func @film_mlp_kernel(%arg0: i32, %arg1: memref<4x8xf32, #tpu.memory_space<vmem>>, %arg2: memref<4x1xf32, #tpu.memory_space<vmem>>, %arg3: memref<8x128xf32, #tpu.memory_space<vmem>>, %arg4: memref<1x128xf32, #tpu.memory_space<vmem>>, %arg5: memref<1x128xf32, #tpu.memory_space<vmem>>, %arg6: memref<128x128xf32, #tpu.memory_space<vmem>>, %arg7: memref<1x128xf32, #tpu.memory_space<vmem>>, %arg8: memref<128x4xf32, #tpu.memory_space<vmem>>, %arg9: memref<1x4xf32, #tpu.memory_space<vmem>>, %arg10: memref<128x4xf32, #tpu.memory_space<vmem>>, %arg11: memref<1x4xf32, #tpu.memory_space<vmem>>, %arg12: memref<4x4xf32, #tpu.memory_space<vmem>>, %arg13: memref<4x4xf32, #tpu.memory_space<vmem>>) attributes {dimension_semantics = [#tpu.dimension_semantics<parallel>], iteration_bounds = array<i64: 1>, scalar_prefetch = 0 : i64, scratch_operands = 0 : i64, tpu.core_type = #tpu.core_type<tc>, window_params = [{transform_indices = @transform_0, window_bounds = array<i64: 4, 8>}, {transform_indices = @transform_1, window_bounds = array<i64: 4, 1>}, {pipeline_mode = #tpu.pipeline_mode<synchronous>, transform_indices = @transform_2, window_bounds = array<i64: 8, 128>}, {pipeline_mode = #tpu.pipeline_mode<synchronous>, transform_indices = @transform_3, window_bounds = array<i64: 1, 128>}, {pipeline_mode = #tpu.pipeline_mode<synchronous>, transform_indices = @transform_4, window_bounds = array<i64: 1, 128>}, {pipeline_mode = #tpu.pipeline_mode<synchronous>, transform_indices = @transform_5, window_bounds = array<i64: 128, 128>}, {pipeline_mode = #tpu.pipeline_mode<synchronous>, transform_indices = @transform_6, window_bounds = array<i64: 1, 128>}, {pipeline_mode = #tpu.pipeline_mode<synchronous>, transform_indices = @transform_7, window_bounds = array<i64: 128, 4>}, {pipeline_mode = #tpu.pipeline_mode<synchronous>, transform_indices = @transform_8, window_bounds = array<i64: 1, 4>}, {pipeline_mode = #tpu.pipeline_mode<synchronous>, transform_indices = @transform_9, window_bounds = array<i64: 128, 4>}, {pipeline_mode = #tpu.pipeline_mode<synchronous>, transform_indices = @transform_10, window_bounds = array<i64: 1, 4>}, {transform_indices = @transform_11, window_bounds = array<i64: 4, 4>}, {transform_indices = @transform_12, window_bounds = array<i64: 4, 4>}]} {
    %c0 = arith.constant 0 : index
    %c0_0 = arith.constant 0 : index
    %0 = vector.load %arg1[%c0, %c0_0] : memref<4x8xf32, #tpu.memory_space<vmem>>, vector<4x8xf32>
    %c0_1 = arith.constant 0 : index
    %c0_2 = arith.constant 0 : index
    %1 = vector.load %arg2[%c0_1, %c0_2] : memref<4x1xf32, #tpu.memory_space<vmem>>, vector<4x1xf32>
    %c0_3 = arith.constant 0 : index
    %c0_4 = arith.constant 0 : index
    %2 = vector.load %arg3[%c0_3, %c0_4] : memref<8x128xf32, #tpu.memory_space<vmem>>, vector<8x128xf32>
    %cst = arith.constant dense<0.000000e+00> : vector<4x128xf32>
    %3 = tpu.matmul %0, %2, %cst {dimension_numbers = #tpu.dot_dimension_numbers<[1], [0], [0], [1], [0, 0, 1, 1], [], []>} : vector<4x8xf32>, vector<8x128xf32>, vector<4x128xf32> -> vector<4x128xf32>
    %c0_5 = arith.constant 0 : index
    %c0_6 = arith.constant 0 : index
    %4 = vector.load %arg4[%c0_5, %c0_6] : memref<1x128xf32, #tpu.memory_space<vmem>>, vector<1x128xf32>
    %5 = vector.broadcast %1 : vector<4x1xf32> to vector<4x128xf32>
    %6 = vector.broadcast %4 : vector<1x128xf32> to vector<4x128xf32>
    %7 = arith.mulf %5, %6 : vector<4x128xf32>
    %8 = arith.addf %3, %7 : vector<4x128xf32>
    %c0_7 = arith.constant 0 : index
    %c0_8 = arith.constant 0 : index
    %9 = vector.load %arg5[%c0_7, %c0_8] : memref<1x128xf32, #tpu.memory_space<vmem>>, vector<1x128xf32>
    %10 = vector.broadcast %9 : vector<1x128xf32> to vector<4x128xf32>
    %11 = arith.addf %8, %10 : vector<4x128xf32>
    %cst_9 = arith.constant 0.000000e+00 : f32
    %12 = vector.broadcast %cst_9 : f32 to vector<4x128xf32>
    %13 = arith.maximumf %11, %12 : vector<4x128xf32>
    %c0_10 = arith.constant 0 : index
    %c0_11 = arith.constant 0 : index
    %14 = vector.load %arg6[%c0_10, %c0_11] : memref<128x128xf32, #tpu.memory_space<vmem>>, vector<128x128xf32>
    %cst_12 = arith.constant dense<0.000000e+00> : vector<4x128xf32>
    %15 = tpu.matmul %13, %14, %cst_12 {dimension_numbers = #tpu.dot_dimension_numbers<[1], [0], [0], [1], [0, 0, 1, 1], [], []>} : vector<4x128xf32>, vector<128x128xf32>, vector<4x128xf32> -> vector<4x128xf32>
    %c0_13 = arith.constant 0 : index
    %c0_14 = arith.constant 0 : index
    %16 = vector.load %arg7[%c0_13, %c0_14] : memref<1x128xf32, #tpu.memory_space<vmem>>, vector<1x128xf32>
    %17 = vector.broadcast %16 : vector<1x128xf32> to vector<4x128xf32>
    %18 = arith.addf %15, %17 : vector<4x128xf32>
    %cst_15 = arith.constant 0.000000e+00 : f32
    %19 = vector.broadcast %cst_15 : f32 to vector<4x128xf32>
    %20 = arith.maximumf %18, %19 : vector<4x128xf32>
    %c0_16 = arith.constant 0 : index
    %c0_17 = arith.constant 0 : index
    %21 = vector.load %arg8[%c0_16, %c0_17] : memref<128x4xf32, #tpu.memory_space<vmem>>, vector<128x4xf32>
    %cst_18 = arith.constant dense<0.000000e+00> : vector<4x4xf32>
    %22 = tpu.matmul %20, %21, %cst_18 {dimension_numbers = #tpu.dot_dimension_numbers<[1], [0], [0], [1], [0, 0, 1, 1], [], []>} : vector<4x128xf32>, vector<128x4xf32>, vector<4x4xf32> -> vector<4x4xf32>
    %c0_19 = arith.constant 0 : index
    %c0_20 = arith.constant 0 : index
    %23 = vector.load %arg9[%c0_19, %c0_20] : memref<1x4xf32, #tpu.memory_space<vmem>>, vector<1x4xf32>
    %24 = vector.broadcast %23 : vector<1x4xf32> to vector<4x4xf32>
    %25 = arith.addf %22, %24 : vector<4x4xf32>
    %c0_21 = arith.constant 0 : index
    %c0_22 = arith.constant 0 : index
    %26 = vector.load %arg12[%c0_21, %c0_22] : memref<4x4xf32, #tpu.memory_space<vmem>>, vector<4x4xf32>
    tpu.vector_store %arg12[%c0_21, %c0_22], %25 {strides = array<i32>} : memref<4x4xf32, #tpu.memory_space<vmem>>, vector<4x4xf32>,
    %c0_23 = arith.constant 0 : index
    %c0_24 = arith.constant 0 : index
    %27 = vector.load %arg10[%c0_23, %c0_24] : memref<128x4xf32, #tpu.memory_space<vmem>>, vector<128x4xf32>
    %cst_25 = arith.constant dense<0.000000e+00> : vector<4x4xf32>
    %28 = tpu.matmul %20, %27, %cst_25 {dimension_numbers = #tpu.dot_dimension_numbers<[1], [0], [0], [1], [0, 0, 1, 1], [], []>} : vector<4x128xf32>, vector<128x4xf32>, vector<4x4xf32> -> vector<4x4xf32>
    %c0_26 = arith.constant 0 : index
    %c0_27 = arith.constant 0 : index
    %29 = vector.load %arg11[%c0_26, %c0_27] : memref<1x4xf32, #tpu.memory_space<vmem>>, vector<1x4xf32>
    %30 = vector.broadcast %29 : vector<1x4xf32> to vector<4x4xf32>
    %31 = arith.addf %28, %30 : vector<4x4xf32>
    %c0_28 = arith.constant 0 : index
    %c0_29 = arith.constant 0 : index
    %32 = vector.load %arg13[%c0_28, %c0_29] : memref<4x4xf32, #tpu.memory_space<vmem>>, vector<4x4xf32>
    tpu.vector_store %arg13[%c0_28, %c0_29], %31 {strides = array<i32>} : memref<4x4xf32, #tpu.memory_space<vmem>>, vector<4x4xf32>,
    return
  }
  func.func @transform_0(%arg0: i32) -> (i32, i32) {
    %c0_i32 = arith.constant 0 : i32
    %c0_i32_0 = arith.constant 0 : i32
    return %arg0, %c0_i32 : i32, i32
  }
  func.func @transform_1(%arg0: i32) -> (i32, i32) {
    %c0_i32 = arith.constant 0 : i32
    %c0_i32_0 = arith.constant 0 : i32
    return %arg0, %c0_i32 : i32, i32
  }
  func.func @transform_2(%arg0: i32) -> (i32, i32) {
    %c0_i32 = arith.constant 0 : i32
    %c0_i32_0 = arith.constant 0 : i32
    %c0_i32_1 = arith.constant 0 : i32
    return %c0_i32, %c0_i32_0 : i32, i32
  }
  func.func @transform_3(%arg0: i32) -> (i32, i32) {
    %c0_i32 = arith.constant 0 : i32
    %c0_i32_0 = arith.constant 0 : i32
    %c0_i32_1 = arith.constant 0 : i32
    return %c0_i32, %c0_i32_0 : i32, i32
  }
  func.func @transform_4(%arg0: i32) -> (i32, i32) {
    %c0_i32 = arith.constant 0 : i32
    %c0_i32_0 = arith.constant 0 : i32
    %c0_i32_1 = arith.constant 0 : i32
    return %c0_i32, %c0_i32_0 : i32, i32
  }
  func.func @transform_5(%arg0: i32) -> (i32, i32) {
    %c0_i32 = arith.constant 0 : i32
    %c0_i32_0 = arith.constant 0 : i32
    %c0_i32_1 = arith.constant 0 : i32
    return %c0_i32, %c0_i32_0 : i32, i32
  }
  func.func @transform_6(%arg0: i32) -> (i32, i32) {
    %c0_i32 = arith.constant 0 : i32
    %c0_i32_0 = arith.constant 0 : i32
    %c0_i32_1 = arith.constant 0 : i32
    return %c0_i32, %c0_i32_0 : i32, i32
  }
  func.func @transform_7(%arg0: i32) -> (i32, i32) {
    %c0_i32 = arith.constant 0 : i32
    %c0_i32_0 = arith.constant 0 : i32
    %c0_i32_1 = arith.constant 0 : i32
    return %c0_i32, %c0_i32_0 : i32, i32
  }
  func.func @transform_8(%arg0: i32) -> (i32, i32) {
    %c0_i32 = arith.constant 0 : i32
    %c0_i32_0 = arith.constant 0 : i32
    %c0_i32_1 = arith.constant 0 : i32
    return %c0_i32, %c0_i32_0 : i32, i32
  }
  func.func @transform_9(%arg0: i32) -> (i32, i32) {
    %c0_i32 = arith.constant 0 : i32
    %c0_i32_0 = arith.constant 0 : i32
    %c0_i32_1 = arith.constant 0 : i32
    return %c0_i32, %c0_i32_0 : i32, i32
  }
  func.func @transform_10(%arg0: i32) -> (i32, i32) {
    %c0_i32 = arith.constant 0 : i32
    %c0_i32_0 = arith.constant 0 : i32
    %c0_i32_1 = arith.constant 0 : i32
    return %c0_i32, %c0_i32_0 : i32, i32
  }
  func.func @transform_11(%arg0: i32) -> (i32, i32) {
    %c0_i32 = arith.constant 0 : i32
    %c0_i32_0 = arith.constant 0 : i32
    return %arg0, %c0_i32 : i32, i32
  }
  func.func @transform_12(%arg0: i32) -> (i32, i32) {
    %c0_i32 = arith.constant 0 : i32
    %c0_i32_0 = arith.constant 0 : i32
    return %arg0, %c0_i32 : i32, i32
  }
}

</mosaic_0001>

<bundles_post_ra>
// kernel: tpu_custom_call.1
= control target key start
LH: loop header
LB: loop body
LE: loop exit
PB: predicated region body
PF: predicated region fallthrough
CT: control target
= control target key end

     0   :  { %18 = vsyncpa [#allocation3], 0  ;;  %vm58_vm0 = vcmask 64512   ;;  %v671_v2 = vmov 0.0   ;;  %vm672_vm1 = vmmov 0   ;;  %v673_v4 = vmov 0   ;;  %s972_s0 = inlined_call_operand.vmem [shape: f32[4,8], index: 0, kind: input, shape index: {}]   ;;  %s973_s1 = inlined_call_operand.vmem [shape: f32[4,1], index: 1, kind: input, shape index: {}]   ;;  %s974_s2 = inlined_call_operand.vmem [shape: f32[8,128], index: 2, kind: input, shape index: {}]   ;;  %s975_s3 = inlined_call_operand.vmem [shape: f32[1,128], index: 3, kind: input, shape index: {}]   ;;  %s976_s4 = inlined_call_operand.vmem [shape: f32[1,128], index: 4, kind: input, shape index: {}]   ;;  %s977_s5 = inlined_call_operand.vmem [shape: f32[128,128], index: 5, kind: input, shape index: {}]   ;;  %s978_s6 = inlined_call_operand.vmem [shape: f32[1,128], index: 6, kind: input, shape index: {}]   ;;  %s979_s7 = inlined_call_operand.vmem [shape: f32[128,4], index: 7, kind: input, shape index: {}]   ;;  %s980_s8 = inlined_call_operand.vmem [shape: f32[1,4], index: 8, kind: input, shape index: {}]   ;;  %s981_s9 = inlined_call_operand.vmem [shape: f32[128,4], index: 9, kind: input, shape index: {}]   ;;  %s982_s10 = inlined_call_operand.vmem [shape: f32[1,4], index: 10, kind: input, shape index: {}]   ;;  %s983_s11 = inlined_call_operand.hbm [shape: f32[4,4], index: 11, kind: output, shape index: {0}]   ;;  %s984_s12 = inlined_call_operand.hbm [shape: f32[4,4], index: 12, kind: output, shape index: {1}]  }
   0x1   :  { %v44_v0 = vld [vmem:[%s974_s2] sm:$0xff]  ;;  %511 = vmatprep.subr.mxu0 %v671_v2  ;;  %513 = vmatprep.mubr.msk.f32.mxu0 %vm672_vm1, %v671_v2  ;;  %v156_v5 = vld [vmem:[%s977_s5 + $0x78] sm:$0xff]  ;;  %v155_v6 = vld [vmem:[%s977_s5 + $0x70] sm:$0xff] }
   0x2   :  { %v42_v1 = vld [vmem:[%s972_s0] sm:$0xf]  ;;  %512 = vmatpush3.msra.mxu0 %v44_v0  ;;  %626 = vset.pattern.permute.xlu0 %v673_v4 }
   0x3   :  { %v43_v3 = vld [vmem:[%s973_s1] sm:$0xf]  ;;  %514 = vmatmul.mubr.msk.f32.vlgmr.msra.gmra.mxu0 %vm58_vm0, %v42_v1  ;;  %516 = vmatprep.subr.mxu1 %v671_v2 }
   0x4   :  { %48 = vperm.xlu0 %626, %v43_v3   ;;  %548 = vmatprep.mubr.msk.f32.mxu1 %vm672_vm1, %v671_v2 }
   0x5   :  { %517 = vmatpush3.msra.mxu1 %v156_v5  ;;  %551 = vmatprep.subr.mxu0 %v671_v2 }
   0x6   :  { %19 = vsyncpa [#allocation5], 0  ;;  %518 = vmatprep.subr.mxu1 %v671_v2  ;;  %v154_v7 = vld [vmem:[%s977_s5 + $0x68] sm:$0xff]  ;;  %583 = vmatprep.mubr.msk.f32.mxu0 %vm672_vm1, %v671_v2  ;;  %v153_v8 = vld [vmem:[%s977_s5 + $0x60] sm:$0xff]  ;;  %s675_s21 = smov [#allocation4]   ;;  %vm328_vm2 = vcmask 27648  }
   0x7   :  { %519 = vmatpush3.msra.mxu1 %v155_v6  ;;  %v152_v9 = vld [vmem:[%s977_s5 + $0x58] sm:$0xff]  ;;  %v151_v10 = vld [vmem:[%s977_s5 + $0x50] sm:$0xff]  ;;  %v150_v11 = vld [vmem:[%s977_s5 + $0x48] sm:$0xff]  ;;  %s440_s22 = sshll.u32 %s675_s21, 4  ;;  %s441_s22 = int_to_ptr.vmem [resolvable:$true] %s440_s22 }
   0x8   :  { %520 = vmatprep.subr.mxu1 %v671_v2  ;;  %v149_v12 = vld [vmem:[%s977_s5 + $0x40] sm:$0xff]  ;;  %v148_v13 = vld [vmem:[%s977_s5 + $0x38] sm:$0xff]  ;;  %v147_v14 = vld [vmem:[%s977_s5 + $0x30] sm:$0xff] }
   0x9   :  { %521 = vmatpush3.msra.mxu1 %v154_v7  ;;  %v146_v15 = vld [vmem:[%s977_s5 + $0x28] sm:$0xff]  ;;  %v145_v16 = vld [vmem:[%s977_s5 + $0x20] sm:$0xff]  ;;  %v144_v17 = vld [vmem:[%s977_s5 + $0x18] sm:$0xff] }
   0xa   :  { %522 = vmatprep.subr.mxu1 %v671_v2  ;;  %v143_v18 = vld [vmem:[%s977_s5 + $0x10] sm:$0xff]  ;;  %v142_v19 = vld [vmem:[%s977_s5 + $0x8] sm:$0xff]  ;;  %v141_v20 = vld [vmem:[%s977_s5] sm:$0xff] }
   0xb   :  { %523 = vmatpush3.msra.mxu1 %v153_v8  ;;  %v250_v21 = vld [vmem:[%s979_s7 + $0x78] sm:$0xff]  ;;  %v249_v22 = vld [vmem:[%s979_s7 + $0x70] sm:$0xff]  ;;  %v248_v23 = vld [vmem:[%s979_s7 + $0x68] sm:$0xff] }
   0xc   :  { %524 = vmatprep.subr.mxu1 %v671_v2  ;;  %552 = vmatpush3.msra.mxu0 %v250_v21  ;;  %v247_v24 = vld [vmem:[%s979_s7 + $0x60] sm:$0xff]  ;;  %v246_v25 = vld [vmem:[%s979_s7 + $0x58] sm:$0xff]  ;;  %v245_v26 = vld [vmem:[%s979_s7 + $0x50] sm:$0xff] }
   0xd   :  { %525 = vmatpush3.msra.mxu1 %v152_v9  ;;  %553 = vmatprep.subr.mxu0 %v671_v2  ;;  %v244_v27 = vld [vmem:[%s979_s7 + $0x48] sm:$0xff]  ;;  %v243_v28 = vld [vmem:[%s979_s7 + $0x40] sm:$0xff]  ;;  %v242_v29 = vld [vmem:[%s979_s7 + $0x38] sm:$0xff] }
   0xe   :  { %526 = vmatprep.subr.mxu1 %v671_v2  ;;  %554 = vmatpush3.msra.mxu0 %v249_v22  ;;  %v241_v30 = vld [vmem:[%s979_s7 + $0x30] sm:$0xff]  ;;  %v240_v31 = vld [vmem:[%s979_s7 + $0x28] sm:$0xff]  ;;  %v239_v32 = vld [vmem:[%s979_s7 + $0x20] sm:$0xff] }
   0xf   :  { %527 = vmatpush3.msra.mxu1 %v151_v10  ;;  %555 = vmatprep.subr.mxu0 %v671_v2  ;;  %v238_v33 = vld [vmem:[%s979_s7 + $0x18] sm:$0xff]  ;;  %v452_v34 = vld [vmem:[%s975_s3] ss:$0 sm:$0xff]  ;;  %v344_v44 = vld [vmem:[%s981_s9 + $0x70] sm:$0xff] }
  0x10   :  { %528 = vmatprep.subr.mxu1 %v671_v2  ;;  %556 = vmatpush3.msra.mxu0 %v248_v23  ;;  %v454_v38 = vld [vmem:[%s976_s4] ss:$0 sm:$0xff]  ;;  %v345_v43 = vld [vmem:[%s981_s9 + $0x78] sm:$0xff]  ;;  %v343_v45 = vld [vmem:[%s981_s9 + $0x68] sm:$0xff] }
  0x11   :  { %529 = vmatpush3.msra.mxu1 %v150_v11  ;;  %557 = vmatprep.subr.mxu0 %v671_v2  ;;  %v342_v46 = vld [vmem:[%s981_s9 + $0x60] sm:$0xff]  ;;  %v341_v47 = vld [vmem:[%s981_s9 + $0x58] sm:$0xff]  ;;  %v340_v48 = vld [vmem:[%s981_s9 + $0x50] sm:$0xff] }
  0x12   :  { %530 = vmatprep.subr.mxu1 %v671_v2  ;;  %558 = vmatpush3.msra.mxu0 %v247_v24  ;;  %v339_v49 = vld [vmem:[%s981_s9 + $0x48] sm:$0xff]  ;;  %v338_v50 = vld [vmem:[%s981_s9 + $0x40] sm:$0xff]  ;;  %v337_v51 = vld [vmem:[%s981_s9 + $0x38] sm:$0xff] }
  0x13   :  { %531 = vmatpush3.msra.mxu1 %v149_v12  ;;  %559 = vmatprep.subr.mxu0 %v671_v2  ;;  %v336_v52 = vld [vmem:[%s981_s9 + $0x30] sm:$0xff]  ;;  %v335_v53 = vld [vmem:[%s981_s9 + $0x28] sm:$0xff]  ;;  %v334_v54 = vld [vmem:[%s981_s9 + $0x20] sm:$0xff] }
  0x14   :  { %532 = vmatprep.subr.mxu1 %v671_v2  ;;  %560 = vmatpush3.msra.mxu0 %v246_v25  ;;  %v333_v55 = vld [vmem:[%s981_s9 + $0x18] sm:$0xff]  ;;  %v237_v56 = vld [vmem:[%s979_s7 + $0x10] sm:$0xff]  ;;  %v236_v58 = vld [vmem:[%s979_s7 + $0x8] sm:$0xff] }
  0x15   :  { %533 = vmatpush3.msra.mxu1 %v148_v13  ;;  %561 = vmatprep.subr.mxu0 %v671_v2  ;;  %v332_v57 = vld [vmem:[%s981_s9 + $0x10] sm:$0xff]  ;;  %v331_v59 = vld [vmem:[%s981_s9 + $0x8] sm:$0xff]  ;;  %v235_v60 = vld [vmem:[%s979_s7] sm:$0xff] }
  0x16   :  { %534 = vmatprep.subr.mxu1 %v671_v2  ;;  %562 = vmatpush3.msra.mxu0 %v245_v26  ;;  %v330_v61 = vld [vmem:[%s981_s9] sm:$0xff]  ;;  %s674_s9 = smov [#allocation2]  }
  0x17   :  { %535 = vmatpush3.msra.mxu1 %v147_v14  ;;  %563 = vmatprep.subr.mxu0 %v671_v2  ;;  %v455_v62 = vld [vmem:[%s978_s6] ss:$0 sm:$0xff]  ;;  %s430_s20 = sshll.u32 %s674_s9, 4  ;;  %s431_s20 = int_to_ptr.vmem [resolvable:$true] %s430_s20 }
  0x18   :  { %536 = vmatprep.subr.mxu1 %v671_v2  ;;  %564 = vmatpush3.msra.mxu0 %v244_v27  ;;  %v457_v4 = vld [vmem:[%s982_s10] ss:$0 sm:$0xff]  ;;  %s627_s6 = scalar_lea.vmem %s431_s20, 64  ;;  %p632_p1 = scmp.lt.s32.totalorder %s431_s20, %s431_s20 }
  0x19   :  { %537 = vmatpush3.msra.mxu1 %v146_v15  ;;  %565 = vmatprep.subr.mxu0 %v671_v2  ;;  %p628_p0 = scmp.ne.s32.totalorder %s431_s20, %s627_s6  ;;  %p633_p2 = scmp.lt.s32.totalorder %s627_s6, %s627_s6 }
  0x1a   :  { %538 = vmatprep.subr.mxu1 %v671_v2  ;;  %566 = vmatpush3.msra.mxu0 %v243_v28 }
  0x1b   :  { %539 = vmatpush3.msra.mxu1 %v145_v16  ;;  %567 = vmatprep.subr.mxu0 %v671_v2  ;;  %p634_p3 = por %p633_p2, %p632_p1 }
  0x1c   :  { %540 = vmatprep.subr.mxu1 %v671_v2  ;;  %568 = vmatpush3.msra.mxu0 %v242_v29 }
  0x1d   :  { %541 = vmatpush3.msra.mxu1 %v144_v17  ;;  %569 = vmatprep.subr.mxu0 %v671_v2  ;;  %p635_p4 = pnand %p634_p3, %p628_p0 }
  0x1e   :  { %542 = vmatprep.subr.mxu1 %v671_v2  ;;  %570 = vmatpush3.msra.mxu0 %v241_v30 }
  0x1f   :  { %543 = vmatpush3.msra.mxu1 %v143_v18  ;;  %571 = vmatprep.subr.mxu0 %v671_v2 }
  0x20   :  { %544 = vmatprep.subr.mxu1 %v671_v2  ;;  %572 = vmatpush3.msra.mxu0 %v240_v31 }
  0x21   :  { %545 = vmatpush3.msra.mxu1 %v142_v19  ;;  %573 = vmatprep.subr.mxu0 %v671_v2 }
  0x22   :  { %546 = vmatprep.subr.mxu1 %v671_v2  ;;  %574 = vmatpush3.msra.mxu0 %v239_v32 }
  0x23   :  { %547 = vmatpush3.msra.mxu1 %v141_v20  ;;  %575 = vmatprep.subr.mxu0 %v671_v2 }
  0x24   :  { %586 = vmatprep.subr.mxu1 %v671_v2  ;;  %576 = vmatpush3.msra.mxu0 %v238_v33 }
  0x25   :  { %577 = vmatprep.subr.mxu0 %v671_v2 }
  0x26   :  { %578 = vmatpush3.msra.mxu0 %v237_v56 }
  0x27   :  { %579 = vmatprep.subr.mxu0 %v671_v2 }
  0x28   :  { %580 = vmatpush3.msra.mxu0 %v236_v58 }
  0x29   :  { %581 = vmatprep.subr.mxu0 %v671_v2 }
  0x2a   :  { %582 = vmatpush3.msra.mxu0 %v235_v60 }
  0x7f   :  { %v49_v35 = vpop.permute.xlu0 %48 }
  0x80   :  { %v57_v36 = vmul.f32 %v452_v34, %v49_v35 }
  0xc3   :  { %v128_v37 = vpop.f32.mrf.mxu0 }
  0xc4   :  { %v129_v39 = vadd.f32 %v128_v37, %v57_v36 }
  0xc5   :  { %v515_v40 = vpop.f32.mrf.mxu0 }
  0xc6   :  { %v139_v41 = vadd.f32 %v454_v38, %v129_v39 }
  0xc8   :  { %v140_v42 = vmax.f32 %v139_v41, 0.0 }
  0xca   :  { %549 = vmatmul.mubr.f32.vlgmr.msra.gmra.mxu1 %v140_v42 }
  0xcb   :  { %587 = vmatpush3.msra.mxu1 %v345_v43  ;;  %618 = vmatprep.mubr.msk.f32.mxu1 %vm672_vm1, %v671_v2 }
  0xcc   :  { %588 = vmatprep.subr.mxu1 %v671_v2 }
  0xcd   :  { %589 = vmatpush3.msra.mxu1 %v344_v44 }
  0xce   :  { %590 = vmatprep.subr.mxu1 %v671_v2 }
  0xcf   :  { %591 = vmatpush3.msra.mxu1 %v343_v45 }
  0xd0   :  { %592 = vmatprep.subr.mxu1 %v671_v2 }
  0xd1   :  { %593 = vmatpush3.msra.mxu1 %v342_v46 }
  0xd2   :  { %594 = vmatprep.subr.mxu1 %v671_v2 }
  0xd3   :  { %595 = vmatpush3.msra.mxu1 %v341_v47 }
  0xd4   :  { %596 = vmatprep.subr.mxu1 %v671_v2 }
  0xd5   :  { %597 = vmatpush3.msra.mxu1 %v340_v48 }
  0xd6   :  { %598 = vmatprep.subr.mxu1 %v671_v2 }
  0xd7   :  { %599 = vmatpush3.msra.mxu1 %v339_v49 }
  0xd8   :  { %600 = vmatprep.subr.mxu1 %v671_v2 }
  0xd9   :  { %601 = vmatpush3.msra.mxu1 %v338_v50 }
  0xda   :  { %602 = vmatprep.subr.mxu1 %v671_v2 }
  0xdb   :  { %603 = vmatpush3.msra.mxu1 %v337_v51 }
  0xdc   :  { %604 = vmatprep.subr.mxu1 %v671_v2 }
  0xdd   :  { %605 = vmatpush3.msra.mxu1 %v336_v52 }
  0xde   :  { %606 = vmatprep.subr.mxu1 %v671_v2 }
  0xdf   :  { %607 = vmatpush3.msra.mxu1 %v335_v53 }
  0xe0   :  { %608 = vmatprep.subr.mxu1 %v671_v2 }
  0xe1   :  { %609 = vmatpush3.msra.mxu1 %v334_v54 }
  0xe2   :  { %610 = vmatprep.subr.mxu1 %v671_v2 }
  0xe3   :  { %611 = vmatpush3.msra.mxu1 %v333_v55 }
  0xe4   :  { %612 = vmatprep.subr.mxu1 %v671_v2 }
  0xe5   :  { %613 = vmatpush3.msra.mxu1 %v332_v57 }
  0xe6   :  { %614 = vmatprep.subr.mxu1 %v671_v2 }
  0xe7   :  { %615 = vmatpush3.msra.mxu1 %v331_v59 }
  0xe8   :  { %616 = vmatprep.subr.mxu1 %v671_v2  ;;  %v456_v2 = vld [vmem:[%s980_s8] ss:$0 sm:$0xff] }
  0xe9   :  { %617 = vmatpush3.msra.mxu1 %v330_v61 }
 0x18a   :  { %v230_v63 = vpop.f32.mrf.mxu1 }
 0x18b   :  { %v231_v0 = vadd.f32 %v455_v62, %v230_v63 }
 0x18c   :  { %v550_v1 = vpop.f32.mrf.mxu1 }
 0x18d   :  { %v234_v3 = vmax.f32 %v231_v0, 0.0 }
 0x18f   :  { %584 = vmatmul.mubr.f32.vlgmr.msra.gmra.mxu0 %v234_v3  ;;  %619 = vmatmul.mubr.f32.vlgmr.msra.gmra.mxu1 %v234_v3 }
 0x24f   :  { %v324_v5 = vpop.f32.mrf.mxu0  ;;  %v419_v6 = vpop.f32.mrf.mxu1 }
 0x250   :  { %v325_v7 = vadd.f32 %v456_v2, %v324_v5  ;;  %v420_v8 = vadd.f32 %v457_v4, %v419_v6 }
 0x251   :  { %v585_v9 = vpop.f32.mrf.mxu0  ;;  %v620_v10 = vpop.f32.mrf.mxu1 }
 0x252   :  { %329 = vst.msk [vmem:[#allocation2] sm:$0xf] %vm328_vm2, %v325_v7  ;;  %423 = vst.msk [vmem:[#allocation4] sm:$0xf] %vm328_vm2, %v420_v8 }
 0x253   :  { %638 = shalt.err (!%p635_p4)
}
 0x254   :  { %433 = dma.vmem_to_hbm [thread:$0]  %s431_s20, 64, %s983_s11, [#allocation3]  }
 0x255   :  { %s647_s5 = scalar_lea.vmem %s441_s22, 64  ;;  %p652_p6 = scmp.lt.s32.totalorder %s441_s22, %s441_s22 }
 0x256   :  { %p648_p5 = scmp.ne.s32.totalorder %s441_s22, %s647_s5  ;;  %p653_p7 = scmp.lt.s32.totalorder %s647_s5, %s647_s5 }
 0x258   :  { %p654_p8 = por %p653_p7, %p652_p6 }
 0x25a   :  { %p655_p9 = pnand %p654_p8, %p648_p5 }
 0x25c   :  { %658 = shalt.err (!%p655_p9)
}
 0x25d   :  { %443 = dma.vmem_to_hbm [thread:$0]  %s441_s22, 64, %s984_s12, [#allocation5]  }
 0x25e   :  { %667 = dma.done.wait [#allocation3], 64  }
 0x25f   :  { %668 = vsyncadd [#allocation3], 4294967232 }
 0x260   :  { %669 = dma.done.wait [#allocation5], 64  }
 0x261   :  { %670 = vsyncadd [#allocation5], 4294967232 }
 0x262   :  { %450 = vsyncpa [#allocation3], 1 }
 0x263   :  { %451 = vsyncpa [#allocation5], 1 }

</bundles_post_ra>
